<compile_context>
chip_gen: v7x
topology: tpu7x:2x2x1
jax: 0.10.0
libtpu: 0.0.40
codegen_flags: <defaults>
</compile_context>

<pallas_src>
import functools

import jax
import jax.numpy as jnp
from jax.experimental import pallas as pl
from jax.experimental.pallas import tpu as pltpu

_LANE = 128
_MIB = 1 << 20
_RESIDENT_Z_BYTES = 8 * _MIB      # keep Z fully VMEM-resident below this (incl. 2x buffering)


def _round_up(x, m):
    return ((x + m - 1) // m) * m


def _pad_nodes(n):
    """Padding granularity for the node dim: bounded overhead, big row tiles."""
    if n >= 2048:
        g = 512
    elif n >= 768:
        g = 256
    else:
        g = 128
    return _round_up(n, g)


def _row_tile(n_pad):
    """Largest row tile that divides n_pad and keeps >=2 row tiles (megacore)."""
    for cand in (512, 256, 128):
        if n_pad % cand == 0 and n_pad // cand >= 2:
            return cand
    return 128          # tiny graph: a single row tile is unavoidable


def _col_tile(n_pad):
    """Adjacency column tile: as large as divides n_pad (bigger DMA chunks)."""
    for cand in (2048, 1024, 512, 256, 128):
        if n_pad % cand == 0:
            return cand
    return 128


def _feat_tile(f_pad):
    for cand in (1024, 512, 256, 128):
        if f_pad % cand == 0:
            return cand
    return 128


def _vmem_limit(nbytes):
    """Per-call VMEM limit sized from the real footprint; v7x-safe cap."""
    return int(min(max(nbytes + 4 * _MIB, 16 * _MIB), 56 * _MIB))


# ----------------------------- kernels --------------------------------------

def _linear_kernel(x_ref, wt_ref, b_ref, alpha_ref, o_ref, acc_ref, *, apply_prelu):
    # grid = (row tiles, feature k tiles);  out[i] = act( sum_k x[i,k] @ wt[k] + b )
    k = pl.program_id(1)

    @pl.when(k == 0)
    def _init():
        acc_ref[...] = jnp.zeros_like(acc_ref)

    acc_ref[...] += jnp.dot(x_ref[...], wt_ref[...],
                            preferred_element_type=jnp.float32)

    @pl.when(k == pl.num_programs(1) - 1)
    def _finalize():
        z = acc_ref[...] + b_ref[...]
        if apply_prelu:
            a = alpha_ref[0]
            z = jnp.where(z >= 0, z, a * z)
        o_ref[...] = z.astype(o_ref.dtype)


def _spmm_prelu_kernel(a_ref, z_ref, alpha_ref, o_ref, acc_ref, *, tk, resident_z):
    # grid = (row tiles, adjacency column tiles);  out[i] = PReLU( sum_k A[i,k] @ Z[k] )
    k = pl.program_id(1)

    @pl.when(k == 0)
    def _init():
        acc_ref[...] = jnp.zeros_like(acc_ref)

    if resident_z:
        off = pl.multiple_of(k * tk, tk)
        z = z_ref[pl.ds(off, tk), :]
    else:
        z = z_ref[...]
    acc_ref[...] += jnp.dot(a_ref[...], z, preferred_element_type=jnp.float32)

    @pl.when(k == pl.num_programs(1) - 1)
    def _finalize():
        a = alpha_ref[0]
        r = acc_ref[...]
        o_ref[...] = jnp.where(r >= 0, r, a * r).astype(o_ref.dtype)


# ----------------------------- wrappers --------------------------------------

def linear_bias_act(x, wt, b2, alpha, *, apply_prelu, out_dtype):
    """out = act(x @ wt + b).  x:[Np,Fin_p] bf16, wt:[Fin_p,Fout_p] bf16."""
    n_pad, fin_p = x.shape
    fout_p = wt.shape[1]
    tm = _row_tile(n_pad)
    tkf = _feat_tile(fin_p)
    ob = jnp.dtype(out_dtype).itemsize
    grid = (n_pad // tm, fin_p // tkf)

    flops = 2 * n_pad * fin_p * fout_p
    wt_reads = 1 if grid[1] == 1 else grid[0]      # weight re-streamed per row tile
    bytes_accessed = int(2 * n_pad * fin_p
                         + 2 * fin_p * fout_p * wt_reads
                         + 4 * fout_p
                         + ob * n_pad * fout_p)
    vmem = (2 * (tm * tkf * 2 + tkf * fout_p * 2 + fout_p * 4 + tm * fout_p * ob)
            + tm * fout_p * 4)

    kernel = functools.partial(_linear_kernel, apply_prelu=apply_prelu)
    return pl.pallas_call(
        kernel,
        out_shape=jax.ShapeDtypeStruct((n_pad, fout_p), out_dtype),
        grid_spec=pltpu.PrefetchScalarGridSpec(
            num_scalar_prefetch=0,
            grid=grid,
            in_specs=[
                pl.BlockSpec((tm, tkf), lambda i, k: (i, k)),
                pl.BlockSpec((tkf, fout_p), lambda i, k: (k, 0)),
                pl.BlockSpec((1, fout_p), lambda i, k: (0, 0)),
                pl.BlockSpec(memory_space=pltpu.SMEM),
            ],
            out_specs=pl.BlockSpec((tm, fout_p), lambda i, k: (i, 0)),
            scratch_shapes=[pltpu.VMEM((tm, fout_p), jnp.float32)],
        ),
        compiler_params=pltpu.CompilerParams(
            dimension_semantics=("parallel", "arbitrary"),
            vmem_limit_bytes=_vmem_limit(vmem)),
        cost_estimate=pl.CostEstimate(flops=int(flops), transcendentals=0,
                                      bytes_accessed=bytes_accessed),
    )(x, wt, b2, alpha)


def spmm_prelu(A_p, z, alpha, *, out_dtype):
    """out = PReLU(A @ z).  A_p:[Np,Np] bf16, z:[Np,Fout_p] bf16."""
    n_pad = A_p.shape[0]
    fout_p = z.shape[1]
    tm = _row_tile(n_pad)
    tk = _col_tile(n_pad)
    ob = jnp.dtype(out_dtype).itemsize
    grid = (n_pad // tm, n_pad // tk)

    z_bytes = n_pad * fout_p * 2
    resident_z = (2 * z_bytes) <= _RESIDENT_Z_BYTES
    if resident_z:
        # Whole Z stays in VMEM (constant block index => fetched once).
        z_spec = pl.BlockSpec((n_pad, fout_p), lambda i, k: (0, 0))
        z_reads = 1
        vmem = (2 * (tm * tk * 2) + 2 * z_bytes
                + 2 * tm * fout_p * ob + tm * fout_p * 4)
    else:
        z_spec = pl.BlockSpec((tk, fout_p), lambda i, k: (k, 0))
        z_reads = grid[0]
        vmem = (2 * (tm * tk * 2 + tk * fout_p * 2 + tm * fout_p * ob)
                + tm * fout_p * 4)

    flops = 2 * n_pad * n_pad * fout_p
    bytes_accessed = int(2 * n_pad * n_pad
                         + 2 * n_pad * fout_p * z_reads
                         + ob * n_pad * fout_p)

    kernel = functools.partial(_spmm_prelu_kernel, tk=tk, resident_z=resident_z)
    # TODO(synk): add pipeline_mode=pl.Buffered(3) on the A spec only if an
    # xprof trace shows exposed A DMA after this tiling.
    return pl.pallas_call(
        kernel,
        out_shape=jax.ShapeDtypeStruct((n_pad, fout_p), out_dtype),
        grid_spec=pltpu.PrefetchScalarGridSpec(
            num_scalar_prefetch=0,
            grid=grid,
            in_specs=[
                pl.BlockSpec((tm, tk), lambda i, k: (i, k)),
                z_spec,
                pl.BlockSpec(memory_space=pltpu.SMEM),
            ],
            out_specs=pl.BlockSpec((tm, fout_p), lambda i, k: (i, 0)),
            scratch_shapes=[pltpu.VMEM((tm, fout_p), jnp.float32)],
        ),
        compiler_params=pltpu.CompilerParams(
            dimension_semantics=("parallel", "arbitrary"),
            vmem_limit_bytes=_vmem_limit(vmem)),
        cost_estimate=pl.CostEstimate(flops=int(flops), transcendentals=0,
                                      bytes_accessed=bytes_accessed),
    )(A_p, z, alpha)


# ----------------------------- parameters ------------------------------------

def init_gcn_new_params(key, inp_dim, hidden_dims):
    """PyTorch-equivalent init: xavier-uniform W, zero bias, PReLU slope 0.25."""
    params = []
    dims = [inp_dim] + list(hidden_dims)
    for i in range(len(hidden_dims)):
        key, wk = jax.random.split(key)
        fan_in, fan_out = dims[i], dims[i + 1]
        bound = (6.0 / (fan_in + fan_out)) ** 0.5
        w = jax.random.uniform(wk, (fan_out, fan_in), jnp.float32,
                               minval=-bound, maxval=bound)
        b = jnp.zeros((fan_out,), jnp.float32)
        alpha = jnp.array([0.25], jnp.float32)      # nn.PReLU() default
        params.append((w, b, alpha))
    return params


def pack_gcn_params(params):
    """One-time prep: transpose W, zero-pad feature dims to 128 lanes, cast to
    bf16.  Avoids per-forward transposes and keeps kernel outputs lane-dense."""
    packed = []
    for (w, b, alpha) in params:
        fout, fin = w.shape
        fin_p, fout_p = _round_up(fin, _LANE), _round_up(fout, _LANE)
        wt = jnp.zeros((fin_p, fout_p), jnp.float32).at[:fin, :fout].set(w.T)
        b2 = jnp.zeros((1, fout_p), jnp.float32).at[0, :fout].set(b)
        packed.append((wt.astype(jnp.bfloat16), b2, alpha))
    return packed


def pack_graph(A, AX):
    """One-time prep of the (static) graph: pad node/feature dims and cast to
    bf16 outside the jit'd forward (padded A rows/cols are zero => inert)."""
    n = A.shape[0]
    fin = AX.shape[1]
    n_pad = _pad_nodes(n)
    fin_p = _round_up(fin, _LANE)
    A_p = jnp.zeros((n_pad, n_pad), jnp.bfloat16).at[:n, :n].set(
        A.astype(jnp.bfloat16))
    x_p = jnp.zeros((n_pad, fin_p), jnp.bfloat16).at[:n, :fin].set(
        AX.astype(jnp.bfloat16))
    return A_p, x_p


# ----------------------------- model forward ---------------------------------

@functools.partial(jax.jit, static_argnames=("n", "hidden_dims"))
def gcn_new_forward(A_p, x_p, packed_params, n, hidden_dims):
    num_layers = len(packed_params)
    last = num_layers - 1

    wt0, b0, a0 = packed_params[0]
    temp = linear_bias_act(x_p, wt0, b0, a0, apply_prelu=True,
                           out_dtype=jnp.float32 if last == 0 else jnp.bfloat16)
    for li in range(1, num_layers):
        wt, b, a = packed_params[li]
        # Z = temp @ W^T + b, materialized once (bf16), then A @ Z + PReLU.
        z = linear_bias_act(temp, wt, b, a, apply_prelu=False,
                            out_dtype=jnp.bfloat16)
        temp = spmm_prelu(A_p, z, a,
                          out_dtype=jnp.float32 if li == last else jnp.bfloat16)

    out = temp[:n, :hidden_dims[-1]].astype(jnp.float32)
    return out[None, :, :]                       # torch.unsqueeze(temp, 0)


# ----------------------------- pure-JAX reference ----------------------------

def gcn_new_reference(A, AX, params):
    """Mirrors the kernel numerics (bf16 matmul inputs, f32 accumulation)."""
    def prelu(z, a):
        return jnp.where(z >= 0, z, a * z)

    w0, b0, a0 = params[0]
    z = jnp.dot(AX.astype(jnp.bfloat16), w0.T.astype(jnp.bfloat16),
                preferred_element_type=jnp.float32) + b0
    temp = prelu(z, a0[0])
    for (w, b, a) in params[1:]:
        tb = temp.astype(jnp.bfloat16)
        z = jnp.dot(tb, w.T.astype(jnp.bfloat16),
                    preferred_element_type=jnp.float32) + b
        az = jnp.dot(A.astype(jnp.bfloat16), z.astype(jnp.bfloat16),
                     preferred_element_type=jnp.float32)
        temp = prelu(az, a[0])
    return temp[None, :, :]


# ----------------------------- demo ------------------------------------------

if __name__ == "__main__":
    key = jax.random.PRNGKey(0)

    N = 200                     # number of graph nodes (exercises padding)
    inp_dim = 96                # node feature dim
    hidden_dims = (64, 48)

    k_feat, k_adj, k_par = jax.random.split(key, 3)

    # Node features AX (already A-propagated, as the module expects).
    AX = jax.random.normal(k_feat, (N, inp_dim), jnp.float32)

    # Dense representation of the (sparse) adjacency: random graph with self
    # loops, row-normalized.
    adj = (jax.random.uniform(k_adj, (N, N)) < 0.05).astype(jnp.float32)
    adj = jnp.maximum(adj, jnp.eye(N, dtype=jnp.float32))
    A = adj / jnp.sum(adj, axis=1, keepdims=True)

    params = init_gcn_new_params(k_par, inp_dim, hidden_dims)
    packed = pack_gcn_params(params)
    A_p, x_p = pack_graph(A, AX)          # one-time, outside the jit'd forward

    out = gcn_new_forward(A_p, x_p, packed, n=N, hidden_dims=hidden_dims)
    jax.block_until_ready(out)

    assert out.shape == (1, N, hidden_dims[-1]), out.shape
    assert out.dtype == jnp.float32

    ref = gcn_new_reference(A, AX, params)
    err = float(jnp.max(jnp.abs(out - ref)))
    assert err < 2e-2, f"max abs error {err}"

    print("KERNEL_OK")
</pallas_src>

<mosaic_0001>
module attributes {stable_mosaic.version = 11 : i64} {
  func.func @_linear_kernel(%arg0: i32, %arg1: i32, %arg2: memref<128x128xbf16, #tpu.memory_space<vmem>>, %arg3: memref<128x128xbf16, #tpu.memory_space<vmem>>, %arg4: memref<1x128xf32, #tpu.memory_space<vmem>>, %arg5: memref<1xf32, #tpu.memory_space<smem>>, %arg6: memref<128x128xbf16, #tpu.memory_space<vmem>>, %arg7: memref<128x128xf32, #tpu.memory_space<vmem>>) attributes {dimension_semantics = [#tpu.dimension_semantics<parallel>, #tpu.dimension_semantics<arbitrary>], iteration_bounds = array<i64: 2, 1>, scalar_prefetch = 0 : i64, scratch_operands = 1 : i64, tpu.core_type = #tpu.core_type<tc>, window_params = [{transform_indices = @transform_0, window_bounds = array<i64: 128, 128>}, {transform_indices = @transform_1, window_bounds = array<i64: 128, 128>}, {pipeline_mode = #tpu.pipeline_mode<synchronous>, transform_indices = @transform_2, window_bounds = array<i64: 1, 128>}, {transform_indices = @transform_3, window_bounds = array<i64: 1>}, {transform_indices = @transform_4, window_bounds = array<i64: 128, 128>}]} {
    %c0_i32 = arith.constant 0 : i32
    %0 = arith.cmpi eq, %arg1, %c0_i32 : i32
    %1 = arith.extui %0 : i1 to i32
    %c0_i32_0 = arith.constant 0 : i32
    %2 = arith.cmpi ne, %1, %c0_i32_0 : i32
    scf.if %2 {
      %cst_10 = arith.constant 0.000000e+00 : f32
      %12 = vector.broadcast %cst_10 : f32 to vector<128x128xf32>
      %c0_11 = arith.constant 0 : index
      %c0_12 = arith.constant 0 : index
      %13 = vector.load %arg7[%c0_11, %c0_12] : memref<128x128xf32, #tpu.memory_space<vmem>>, vector<128x128xf32>
      tpu.vector_store %arg7[%c0_11, %c0_12], %12 {strides = array<i32>} : memref<128x128xf32, #tpu.memory_space<vmem>>, vector<128x128xf32>,
    } else {
    }
    %c0 = arith.constant 0 : index
    %c0_1 = arith.constant 0 : index
    %3 = vector.load %arg7[%c0, %c0_1] : memref<128x128xf32, #tpu.memory_space<vmem>>, vector<128x128xf32>
    %c0_2 = arith.constant 0 : index
    %c0_3 = arith.constant 0 : index
    %4 = vector.load %arg2[%c0_2, %c0_3] : memref<128x128xbf16, #tpu.memory_space<vmem>>, vector<128x128xbf16>
    %c0_4 = arith.constant 0 : index
    %c0_5 = arith.constant 0 : index
    %5 = vector.load %arg3[%c0_4, %c0_5] : memref<128x128xbf16, #tpu.memory_space<vmem>>, vector<128x128xbf16>
    %cst = arith.constant dense<0.000000e+00> : vector<128x128xf32>
    %6 = tpu.matmul %4, %5, %cst {dimension_numbers = #tpu.dot_dimension_numbers<[1], [0], [0], [1], [0, 0, 1, 1], [], []>} : vector<128x128xbf16>, vector<128x128xbf16>, vector<128x128xf32> -> vector<128x128xf32>
    %7 = arith.addf %3, %6 : vector<128x128xf32>
    %c0_6 = arith.constant 0 : index
    %c0_7 = arith.constant 0 : index
    %8 = vector.load %arg7[%c0_6, %c0_7] : memref<128x128xf32, #tpu.memory_space<vmem>>, vector<128x128xf32>
    tpu.vector_store %arg7[%c0_6, %c0_7], %7 {strides = array<i32>} : memref<128x128xf32, #tpu.memory_space<vmem>>, vector<128x128xf32>,
    %c0_i32_8 = arith.constant 0 : i32
    %9 = arith.cmpi eq, %arg1, %c0_i32_8 : i32
    %10 = arith.extui %9 : i1 to i32
    %c0_i32_9 = arith.constant 0 : i32
    %11 = arith.cmpi ne, %10, %c0_i32_9 : i32
    scf.if %11 {
      %c0_10 = arith.constant 0 : index
      %c0_11 = arith.constant 0 : index
      %12 = vector.load %arg7[%c0_10, %c0_11] : memref<128x128xf32, #tpu.memory_space<vmem>>, vector<128x128xf32>
      %c0_12 = arith.constant 0 : index
      %c0_13 = arith.constant 0 : index
      %13 = vector.load %arg4[%c0_12, %c0_13] : memref<1x128xf32, #tpu.memory_space<vmem>>, vector<1x128xf32>
      %14 = vector.broadcast %13 : vector<1x128xf32> to vector<128x128xf32>
      %15 = arith.addf %12, %14 : vector<128x128xf32>
      %16 = arith.truncf %15 : vector<128x128xf32> to vector<128x128xbf16>
      %c0_14 = arith.constant 0 : index
      %c0_15 = arith.constant 0 : index
      %17 = vector.load %arg6[%c0_14, %c0_15] : memref<128x128xbf16, #tpu.memory_space<vmem>>, vector<128x128xbf16>
      tpu.vector_store %arg6[%c0_14, %c0_15], %16 {strides = array<i32>} : memref<128x128xbf16, #tpu.memory_space<vmem>>, vector<128x128xbf16>,
    } else {
    }
    return
  }
  func.func @transform_0(%arg0: i32, %arg1: i32) -> (i32, i32) {
    %c0_i32 = arith.constant 0 : i32
    return %arg0, %arg1 : i32, i32
  }
  func.func @transform_1(%arg0: i32, %arg1: i32) -> (i32, i32) {
    %c0_i32 = arith.constant 0 : i32
    %c0_i32_0 = arith.constant 0 : i32
    return %arg1, %c0_i32 : i32, i32
  }
  func.func @transform_2(%arg0: i32, %arg1: i32) -> (i32, i32) {
    %c0_i32 = arith.constant 0 : i32
    %c0_i32_0 = arith.constant 0 : i32
    %c0_i32_1 = arith.constant 0 : i32
    return %c0_i32, %c0_i32_0 : i32, i32
  }
  func.func @transform_3(%arg0: i32, %arg1: i32) -> i32 {
    %c0_i32 = arith.constant 0 : i32
    %c0_i32_0 = arith.constant 0 : i32
    return %c0_i32 : i32
  }
  func.func @transform_4(%arg0: i32, %arg1: i32) -> (i32, i32) {
    %c0_i32 = arith.constant 0 : i32
    %c0_i32_0 = arith.constant 0 : i32
    return %arg0, %c0_i32 : i32, i32
  }
}

module attributes {stable_mosaic.version = 11 : i64} {
  func.func @_linear_kernel(%arg0: i32, %arg1: i32, %arg2: memref<128x128xbf16, #tpu.memory_space<vmem>>, %arg3: memref<128x128xbf16, #tpu.memory_space<vmem>>, %arg4: memref<1x128xf32, #tpu.memory_space<vmem>>, %arg5: memref<1xf32, #tpu.memory_space<smem>>, %arg6: memref<128x128xbf16, #tpu.memory_space<vmem>>, %arg7: memref<128x128xf32, #tpu.memory_space<vmem>>) attributes {dimension_semantics = [#tpu.dimension_semantics<parallel>, #tpu.dimension_semantics<arbitrary>], iteration_bounds = array<i64: 2, 1>, scalar_prefetch = 0 : i64, scratch_operands = 1 : i64, tpu.core_type = #tpu.core_type<tc>, window_params = [{transform_indices = @transform_0, window_bounds = array<i64: 128, 128>}, {transform_indices = @transform_1, window_bounds = array<i64: 128, 128>}, {pipeline_mode = #tpu.pipeline_mode<synchronous>, transform_indices = @transform_2, window_bounds = array<i64: 1, 128>}, {transform_indices = @transform_3, window_bounds = array<i64: 1>}, {transform_indices = @transform_4, window_bounds = array<i64: 128, 128>}]} {
    %c0_i32 = arith.constant 0 : i32
    %0 = arith.cmpi eq, %arg1, %c0_i32 : i32
    %1 = arith.extui %0 : i1 to i32
    %c0_i32_0 = arith.constant 0 : i32
    %2 = arith.cmpi ne, %1, %c0_i32_0 : i32
    scf.if %2 {
      %cst_10 = arith.constant 0.000000e+00 : f32
      %12 = vector.broadcast %cst_10 : f32 to vector<128x128xf32>
      %c0_11 = arith.constant 0 : index
      %c0_12 = arith.constant 0 : index
      %13 = vector.load %arg7[%c0_11, %c0_12] : memref<128x128xf32, #tpu.memory_space<vmem>>, vector<128x128xf32>
      tpu.vector_store %arg7[%c0_11, %c0_12], %12 {strides = array<i32>} : memref<128x128xf32, #tpu.memory_space<vmem>>, vector<128x128xf32>,
    } else {
    }
    %c0 = arith.constant 0 : index
    %c0_1 = arith.constant 0 : index
    %3 = vector.load %arg7[%c0, %c0_1] : memref<128x128xf32, #tpu.memory_space<vmem>>, vector<128x128xf32>
    %c0_2 = arith.constant 0 : index
    %c0_3 = arith.constant 0 : index
    %4 = vector.load %arg2[%c0_2, %c0_3] : memref<128x128xbf16, #tpu.memory_space<vmem>>, vector<128x128xbf16>
    %c0_4 = arith.constant 0 : index
    %c0_5 = arith.constant 0 : index
    %5 = vector.load %arg3[%c0_4, %c0_5] : memref<128x128xbf16, #tpu.memory_space<vmem>>, vector<128x128xbf16>
    %cst = arith.constant dense<0.000000e+00> : vector<128x128xf32>
    %6 = tpu.matmul %4, %5, %cst {dimension_numbers = #tpu.dot_dimension_numbers<[1], [0], [0], [1], [0, 0, 1, 1], [], []>} : vector<128x128xbf16>, vector<128x128xbf16>, vector<128x128xf32> -> vector<128x128xf32>
    %7 = arith.addf %3, %6 : vector<128x128xf32>
    %c0_6 = arith.constant 0 : index
    %c0_7 = arith.constant 0 : index
    %8 = vector.load %arg7[%c0_6, %c0_7] : memref<128x128xf32, #tpu.memory_space<vmem>>, vector<128x128xf32>
    tpu.vector_store %arg7[%c0_6, %c0_7], %7 {strides = array<i32>} : memref<128x128xf32, #tpu.memory_space<vmem>>, vector<128x128xf32>,
    %c0_i32_8 = arith.constant 0 : i32
    %9 = arith.cmpi eq, %arg1, %c0_i32_8 : i32
    %10 = arith.extui %9 : i1 to i32
    %c0_i32_9 = arith.constant 0 : i32
    %11 = arith.cmpi ne, %10, %c0_i32_9 : i32
    scf.if %11 {
      %c0_10 = arith.constant 0 : index
      %c0_11 = arith.constant 0 : index
      %12 = vector.load %arg7[%c0_10, %c0_11] : memref<128x128xf32, #tpu.memory_space<vmem>>, vector<128x128xf32>
      %c0_12 = arith.constant 0 : index
      %c0_13 = arith.constant 0 : index
      %13 = vector.load %arg4[%c0_12, %c0_13] : memref<1x128xf32, #tpu.memory_space<vmem>>, vector<1x128xf32>
      %14 = vector.broadcast %13 : vector<1x128xf32> to vector<128x128xf32>
      %15 = arith.addf %12, %14 : vector<128x128xf32>
      %c0_14 = arith.constant 0 : index
      %16 = memref.load %arg5[%c0_14] : memref<1xf32, #tpu.memory_space<smem>>
      %cst_15 = arith.constant 0.000000e+00 : f32
      %17 = vector.broadcast %cst_15 : f32 to vector<128x128xf32>
      %18 = arith.cmpf oge, %15, %17 : vector<128x128xf32>
      %19 = vector.broadcast %16 : f32 to vector<128x128xf32>
      %20 = arith.mulf %19, %15 : vector<128x128xf32>
      %21 = arith.select %18, %15, %20 : vector<128x128xi1>, vector<128x128xf32>
      %22 = arith.truncf %21 : vector<128x128xf32> to vector<128x128xbf16>
      %c0_16 = arith.constant 0 : index
      %c0_17 = arith.constant 0 : index
      %23 = vector.load %arg6[%c0_16, %c0_17] : memref<128x128xbf16, #tpu.memory_space<vmem>>, vector<128x128xbf16>
      tpu.vector_store %arg6[%c0_16, %c0_17], %22 {strides = array<i32>} : memref<128x128xbf16, #tpu.memory_space<vmem>>, vector<128x128xbf16>,
    } else {
    }
    return
  }
  func.func @transform_0(%arg0: i32, %arg1: i32) -> (i32, i32) {
    %c0_i32 = arith.constant 0 : i32
    return %arg0, %arg1 : i32, i32
  }
  func.func @transform_1(%arg0: i32, %arg1: i32) -> (i32, i32) {
    %c0_i32 = arith.constant 0 : i32
    %c0_i32_0 = arith.constant 0 : i32
    return %arg1, %c0_i32 : i32, i32
  }
  func.func @transform_2(%arg0: i32, %arg1: i32) -> (i32, i32) {
    %c0_i32 = arith.constant 0 : i32
    %c0_i32_0 = arith.constant 0 : i32
    %c0_i32_1 = arith.constant 0 : i32
    return %c0_i32, %c0_i32_0 : i32, i32
  }
  func.func @transform_3(%arg0: i32, %arg1: i32) -> i32 {
    %c0_i32 = arith.constant 0 : i32
    %c0_i32_0 = arith.constant 0 : i32
    return %c0_i32 : i32
  }
  func.func @transform_4(%arg0: i32, %arg1: i32) -> (i32, i32) {
    %c0_i32 = arith.constant 0 : i32
    %c0_i32_0 = arith.constant 0 : i32
    return %arg0, %c0_i32 : i32, i32
  }
}

module attributes {stable_mosaic.version = 11 : i64} {
  func.func @_spmm_prelu_kernel(%arg0: i32, %arg1: i32, %arg2: memref<128x256xbf16, #tpu.memory_space<vmem>>, %arg3: memref<256x128xbf16, #tpu.memory_space<vmem>>, %arg4: memref<1xf32, #tpu.memory_space<smem>>, %arg5: memref<128x128xf32, #tpu.memory_space<vmem>>, %arg6: memref<128x128xf32, #tpu.memory_space<vmem>>) attributes {dimension_semantics = [#tpu.dimension_semantics<parallel>, #tpu.dimension_semantics<arbitrary>], iteration_bounds = array<i64: 2, 1>, scalar_prefetch = 0 : i64, scratch_operands = 1 : i64, tpu.core_type = #tpu.core_type<tc>, window_params = [{transform_indices = @transform_0, window_bounds = array<i64: 128, 256>}, {pipeline_mode = #tpu.pipeline_mode<synchronous>, transform_indices = @transform_1, window_bounds = array<i64: 256, 128>}, {transform_indices = @transform_2, window_bounds = array<i64: 1>}, {transform_indices = @transform_3, window_bounds = array<i64: 128, 128>}]} {
    %c0_i32 = arith.constant 0 : i32
    %0 = arith.cmpi eq, %arg1, %c0_i32 : i32
    %1 = arith.extui %0 : i1 to i32
    %c0_i32_0 = arith.constant 0 : i32
    %2 = arith.cmpi ne, %1, %c0_i32_0 : i32
    scf.if %2 {
      %cst_9 = arith.constant 0.000000e+00 : f32
      %15 = vector.broadcast %cst_9 : f32 to vector<128x128xf32>
      %c0_10 = arith.constant 0 : index
      %c0_11 = arith.constant 0 : index
      %16 = vector.load %arg6[%c0_10, %c0_11] : memref<128x128xf32, #tpu.memory_space<vmem>>, vector<128x128xf32>
      tpu.vector_store %arg6[%c0_10, %c0_11], %15 {strides = array<i32>} : memref<128x128xf32, #tpu.memory_space<vmem>>, vector<128x128xf32>,
    } else {
    }
    %c256_i32 = arith.constant 256 : i32
    %3 = arith.muli %arg1, %c256_i32 : i32
    %4 = tpu.assume_multiple %3, 256 : i32
    %5 = arith.index_cast %4 : i32 to index
    %c0 = arith.constant 0 : index
    %6 = vector.load %arg3[%5, %c0] : memref<256x128xbf16, #tpu.memory_space<vmem>>, vector<256x128xbf16>
    %c0_1 = arith.constant 0 : index
    %c0_2 = arith.constant 0 : index
    %7 = vector.load %arg6[%c0_1, %c0_2] : memref<128x128xf32, #tpu.memory_space<vmem>>, vector<128x128xf32>
    %c0_3 = arith.constant 0 : index
    %c0_4 = arith.constant 0 : index
    %8 = vector.load %arg2[%c0_3, %c0_4] : memref<128x256xbf16, #tpu.memory_space<vmem>>, vector<128x256xbf16>
    %cst = arith.constant dense<0.000000e+00> : vector<128x128xf32>
    %9 = tpu.matmul %8, %6, %cst {dimension_numbers = #tpu.dot_dimension_numbers<[1], [0], [0], [1], [0, 0, 1, 1], [], []>} : vector<128x256xbf16>, vector<256x128xbf16>, vector<128x128xf32> -> vector<128x128xf32>
    %10 = arith.addf %7, %9 : vector<128x128xf32>
    %c0_5 = arith.constant 0 : index
    %c0_6 = arith.constant 0 : index
    %11 = vector.load %arg6[%c0_5, %c0_6] : memref<128x128xf32, #tpu.memory_space<vmem>>, vector<128x128xf32>
    tpu.vector_store %arg6[%c0_5, %c0_6], %10 {strides = array<i32>} : memref<128x128xf32, #tpu.memory_space<vmem>>, vector<128x128xf32>,
    %c0_i32_7 = arith.constant 0 : i32
    %12 = arith.cmpi eq, %arg1, %c0_i32_7 : i32
    %13 = arith.extui %12 : i1 to i32
    %c0_i32_8 = arith.constant 0 : i32
    %14 = arith.cmpi ne, %13, %c0_i32_8 : i32
    scf.if %14 {
      %c0_9 = arith.constant 0 : index
      %15 = memref.load %arg4[%c0_9] : memref<1xf32, #tpu.memory_space<smem>>
      %c0_10 = arith.constant 0 : index
      %c0_11 = arith.constant 0 : index
      %16 = vector.load %arg6[%c0_10, %c0_11] : memref<128x128xf32, #tpu.memory_space<vmem>>, vector<128x128xf32>
      %cst_12 = arith.constant 0.000000e+00 : f32
      %17 = vector.broadcast %cst_12 : f32 to vector<128x128xf32>
      %18 = arith.cmpf oge, %16, %17 : vector<128x128xf32>
      %19 = vector.broadcast %15 : f32 to vector<128x128xf32>
      %20 = arith.mulf %19, %16 : vector<128x128xf32>
      %21 = arith.select %18, %16, %20 : vector<128x128xi1>, vector<128x128xf32>
      %c0_13 = arith.constant 0 : index
      %c0_14 = arith.constant 0 : index
      %22 = vector.load %arg5[%c0_13, %c0_14] : memref<128x128xf32, #tpu.memory_space<vmem>>, vector<128x128xf32>
      tpu.vector_store %arg5[%c0_13, %c0_14], %21 {strides = array<i32>} : memref<128x128xf32, #tpu.memory_space<vmem>>, vector<128x128xf32>,
    } else {
    }
    return
  }
  func.func @transform_0(%arg0: i32, %arg1: i32) -> (i32, i32) {
    %c0_i32 = arith.constant 0 : i32
    return %arg0, %arg1 : i32, i32
  }
  func.func @transform_1(%arg0: i32, %arg1: i32) -> (i32, i32) {
    %c0_i32 = arith.constant 0 : i32
    %c0_i32_0 = arith.constant 0 : i32
    %c0_i32_1 = arith.constant 0 : i32
    return %c0_i32, %c0_i32_0 : i32, i32
  }
  func.func @transform_2(%arg0: i32, %arg1: i32) -> i32 {
    %c0_i32 = arith.constant 0 : i32
    %c0_i32_0 = arith.constant 0 : i32
    return %c0_i32 : i32
  }
  func.func @transform_3(%arg0: i32, %arg1: i32) -> (i32, i32) {
    %c0_i32 = arith.constant 0 : i32
    %c0_i32_0 = arith.constant 0 : i32
    return %arg0, %c0_i32 : i32, i32
  }
}

</mosaic_0001>

<bundles_post_ra>
// kernel: gcn_new_forward.4
= control target key start
LH: loop header
LB: loop body
LE: loop exit
PB: predicated region body
PF: predicated region fallthrough
CT: control target
= control target key end

     0   :  { %s1007_s15 = smov 0   ;;  %s1009_s16 = smov 0   ;;  %s1094_s0 = inlined_call_operand.vmem [shape: bf16[256,128], index: 0, kind: input, shape index: {}]   ;;  %s1095_s1 = inlined_call_operand.vmem [shape: bf16[128,128], index: 1, kind: input, shape index: {}]   ;;  %s1096_s2 = inlined_call_operand.vmem [shape: f32[1,128], index: 2, kind: input, shape index: {}]   ;;  %s1097_s3 = inlined_call_operand.<no memory space> [shape: f32[1], index: 3, kind: input, shape index: {}]   ;;  %s1098_s4 = inlined_call_operand.vmem [shape: bf16[256,128], index: 4, kind: output, shape index: {}]  }
   0x1   :  { %s1011_s17 = smov 0  }
   0x2 LB: > { %s27_s3 = sadd.s32 1, %s976_s16  ;;  %p751_p0 = scmp.ge.s32.totalorder %s980_s17, 1  ;;  %s980_s17 = sphi %s1011_s17, %s15_s17   ;;  %s976_s16 = sphi %s1009_s16, %s1100_s16   ;;  %s972_s15 = sphi %s1007_s15, %s1099_s15  }
   0x3   : > { %p29_p1 = scmp.ge.s32.totalorder %s27_s3, 2  ;;  %p192_p2 = scmp.lt.s32.totalorder %s980_s17, 3 }
   0x5   : > { %s1102_s3 = smov (%p29_p1, %s27_s3), 0  ;;  %p193_p3 = pnand %p751_p0, %p192_p2 }
   0x6   : > { %v942_v0 = vld [vmem:[%s1095_s1] sm:$0xff] (!%p193_p3)   ;;  %s752_s20 = sshll.u32 (!%p193_p3), %s972_s15, 4  ;;  %v943_v1 = vld [vmem:[%s1095_s1 + $0x8] sm:$0xff] (!%p193_p3)   ;;  %v944_v2 = vld [vmem:[%s1095_s1 + $0x10] sm:$0xff] (!%p193_p3)  }
   0x7   : > { %196 = sbr.rel (%p193_p3) target bundleno = 267 (0x10b), region = 36  ;;  %p227_p4 = scmp.lt.s32.totalorder (!%p193_p3), %s752_s20, 31  ;;  %870 = vmatprep.subr.bf16.mxu0 (!%p193_p3), %v942_v0  ;;  %902 = vmatprep.subr.bf16.mxu1 (!%p193_p3), %v942_v0  ;;  %v945_v3 = vld [vmem:[%s1095_s1 + $0x18] sm:$0xff] (!%p193_p3)   ;;  %v946_v6 = vld [vmem:[%s1095_s1 + $0x20] sm:$0xff] (!%p193_p3)   ;;  %v947_v7 = vld [vmem:[%s1095_s1 + $0x28] sm:$0xff] (!%p193_p3)  }
   0x8   : > { %871 = vmatpush3.bf16.msra.mxu0 (!%p193_p3), %v942_v0  ;;  %910 = vmatpush3.bf16.msra.mxu1 (!%p193_p3), %v942_v0  ;;  %v948_v8 = vld [vmem:[%s1095_s1 + $0x30] sm:$0xff] (!%p193_p3)   ;;  %v949_v9 = vld [vmem:[%s1095_s1 + $0x38] sm:$0xff] (!%p193_p3)   ;;  %v772_v17 = vld [vmem:[%s1096_s2] ss:$0 sm:$0xff] (!%p193_p3) }
   0x9   : > { %872 = vmatprep.subr.bf16.mxu0 (!%p193_p3), %v943_v1  ;;  %903 = vmatprep.subr.bf16.mxu1 (!%p193_p3), %v943_v1 }
   0xc   : > { %873 = vmatpush3.bf16.msra.mxu0 (!%p193_p3), %v943_v1  ;;  %911 = vmatpush3.bf16.msra.mxu1 (!%p193_p3), %v943_v1 }
   0xd   : > { %874 = vmatprep.subr.bf16.mxu0 (!%p193_p3), %v944_v2  ;;  %904 = vmatprep.subr.bf16.mxu1 (!%p193_p3), %v944_v2 }
   0xe   : > { %s1104_s20 = smov (!%p227_p4, %s752_s20), 31 }
   0xf   : > { %s753_s25 = sshll.u32 %s1104_s20, 2 }
  0x10   : > { %s1042_s28 = scalar_lea.vmem %s1094_s0, %s753_s25  ;;  %875 = vmatpush3.bf16.msra.mxu0 %v944_v2  ;;  %912 = vmatpush3.bf16.msra.mxu1 %v944_v2  ;;  %s1075_s19 = scalar_lea.vmem %s1098_s4, %s753_s25 }
  0x11   : > { %v950_v4 = vld [vmem:[%s1042_s28] sm:$0xff]   ;;  %876 = vmatprep.subr.bf16.mxu0 %v945_v3  ;;  %905 = vmatprep.subr.bf16.mxu1 %v945_v3  ;;  %v952_v10 = vld [vmem:[%s1042_s28 + $0x8] sm:$0xff]   ;;  %v954_v12 = vld [vmem:[%s1042_s28 + $0x10] sm:$0xff]  }
  0x12   : > { %v951_v5 = vld [vmem:[%s1042_s28 + $0x20] sm:$0xff]   ;;  %886 = vmatprep.mubr.bf16.mxu0 %v950_v4  ;;  %v953_v11 = vld [vmem:[%s1042_s28 + $0x28] sm:$0xff]   ;;  %v955_v13 = vld [vmem:[%s1042_s28 + $0x30] sm:$0xff]  }
  0x13   : > { %894 = vmatprep.mubr.bf16.mxu1 %v951_v5  ;;  %v956_v14 = vld [vmem:[%s1042_s28 + $0x18] sm:$0xff]  }
  0x14   : > { %877 = vmatpush3.bf16.msra.mxu0 %v945_v3  ;;  %913 = vmatpush3.bf16.msra.mxu1 %v945_v3  ;;  %v957_v15 = vld [vmem:[%s1042_s28 + $0x38] sm:$0xff]  }
  0x15   : > { %878 = vmatprep.subr.bf16.mxu0 %v946_v6  ;;  %906 = vmatprep.subr.bf16.mxu1 %v946_v6 }
  0x18   : > { %879 = vmatpush3.bf16.msra.mxu0 %v946_v6  ;;  %914 = vmatpush3.bf16.msra.mxu1 %v946_v6 }
  0x19   : > { %880 = vmatprep.subr.bf16.mxu0 %v947_v7  ;;  %907 = vmatprep.subr.bf16.mxu1 %v947_v7 }
  0x1c   : > { %881 = vmatpush3.bf16.msra.mxu0 %v947_v7  ;;  %915 = vmatpush3.bf16.msra.mxu1 %v947_v7 }
  0x1d   : > { %882 = vmatprep.subr.bf16.mxu0 %v948_v8  ;;  %908 = vmatprep.subr.bf16.mxu1 %v948_v8 }
  0x20   : > { %883 = vmatpush3.bf16.msra.mxu0 %v948_v8  ;;  %916 = vmatpush3.bf16.msra.mxu1 %v948_v8 }
  0x21   : > { %884 = vmatprep.subr.bf16.mxu0 %v949_v9  ;;  %909 = vmatprep.subr.bf16.mxu1 %v949_v9 }
  0x24   : > { %885 = vmatpush3.bf16.msra.mxu0 %v949_v9  ;;  %917 = vmatpush3.bf16.msra.mxu1 %v949_v9 }
  0x27   : > { %887 = vmatmul.mubr.bf16.vlgmr.msra.gmra.mrb[0].mxu0 %v952_v10  ;;  %895 = vmatmul.mubr.bf16.vlgmr.msra.gmra.mrb[0].mxu1 %v953_v11 }
  0x28   : > { %890 = vmatprep.mubr.bf16.mxu0 %v954_v12  ;;  %898 = vmatprep.mubr.bf16.mxu1 %v955_v13 }
  0x2f   : > { %891 = vmatmul.mubr.bf16.gmra.mrb[4].mxu0 %v956_v14  ;;  %899 = vmatmul.mubr.bf16.gmra.mrb[4].mxu1 %v957_v15 }
  0xfa   : > { %v888_v16 = vpop.f32.mrb[0].mxu0  ;;  %v896_v18 = vpop.f32.mrb[0].mxu1 }
  0xfb   : > { %v446_v19 = vpop.f32.mrb[1].mxu0  ;;  %v478_v20 = vpop.f32.mrb[1].mxu1  ;;  %v569_v23 = vadd.f32 %v888_v16, %v772_v17  ;;  %v577_v24 = vadd.f32 %v896_v18, %v772_v17 }
  0xfc   : > { %v889_v21 = vpop.f32.mrb[2].mxu0  ;;  %v897_v22 = vpop.f32.mrb[2].mxu1  ;;  %v567_v29 = vadd.f32 %v772_v17, %v446_v19  ;;  %v575_v30 = vadd.f32 %v772_v17, %v478_v20 }
  0xfd   : > { %v570_v25 = vadd.f32 %v889_v21, %v772_v17  ;;  %v578_v26 = vadd.f32 %v897_v22, %v772_v17  ;;  %v449_v27 = vpop.f32.mrb[3].mxu0  ;;  %v481_v28 = vpop.f32.mrb[3].mxu1 }
  0xfe   : > { %v568_v31 = vadd.f32 %v772_v17, %v449_v27  ;;  %v576_v32 = vadd.f32 %v772_v17, %v481_v28 }
  0xff   : > { %v815_v33 = vpack.c.bf16 %v570_v25, %v569_v23  ;;  %v835_v34 = vpack.c.bf16 %v578_v26, %v577_v24 }
 0x100   : > { %v810_v35 = vpack.c.bf16 %v568_v31, %v567_v29  ;;  %v830_v36 = vpack.c.bf16 %v576_v32, %v575_v30 }
 0x101   : > { %847 = vst [vmem:[%s1075_s19 + $0x8] sm:$0xff] %v815_v33   ;;  %851 = vst [vmem:[%s1075_s19 + $0x28] sm:$0xff] %v835_v34  }
 0x102   : > { %811 = vst [vmem:[%s1075_s19] sm:$0xff] %v810_v35   ;;  %850 = vst [vmem:[%s1075_s19 + $0x20] sm:$0xff] %v830_v36   ;;  %v892_v37 = vpop.f32.mrb[4].mxu0  ;;  %v900_v38 = vpop.f32.mrb[4].mxu1 }
 0x103   : > { %v462_v39 = vpop.f32.mrb[5].mxu0  ;;  %v494_v40 = vpop.f32.mrb[5].mxu1  ;;  %v573_v43 = vadd.f32 %v892_v37, %v772_v17  ;;  %v581_v44 = vadd.f32 %v900_v38, %v772_v17 }
 0x104   : > { %v893_v41 = vpop.f32.mrb[6].mxu0  ;;  %v901_v42 = vpop.f32.mrb[6].mxu1  ;;  %v571_v49 = vadd.f32 %v772_v17, %v462_v39  ;;  %v579_v50 = vadd.f32 %v772_v17, %v494_v40 }
 0x105   : > { %v574_v45 = vadd.f32 %v893_v41, %v772_v17  ;;  %v582_v46 = vadd.f32 %v901_v42, %v772_v17  ;;  %v465_v47 = vpop.f32.mrb[7].mxu0  ;;  %v497_v48 = vpop.f32.mrb[7].mxu1 }
 0x106   : > { %v572_v51 = vadd.f32 %v772_v17, %v465_v47  ;;  %v580_v52 = vadd.f32 %v772_v17, %v497_v48 }
 0x107   : > { %v825_v53 = vpack.c.bf16 %v574_v45, %v573_v43  ;;  %v845_v54 = vpack.c.bf16 %v582_v46, %v581_v44 }
 0x108   : > { %v820_v55 = vpack.c.bf16 %v572_v51, %v571_v49  ;;  %v840_v56 = vpack.c.bf16 %v580_v52, %v579_v50 }
 0x109   : > { %849 = vst [vmem:[%s1075_s19 + $0x18] sm:$0xff] %v825_v53   ;;  %853 = vst [vmem:[%s1075_s19 + $0x38] sm:$0xff] %v845_v54  }
 0x10a   : > { %848 = vst [vmem:[%s1075_s19 + $0x10] sm:$0xff] %v820_v55   ;;  %852 = vst [vmem:[%s1075_s19 + $0x30] sm:$0xff] %v840_v56  }
 0x10b PF: > { %s15_s17 = sadd.s32 1, %s980_s17   ;;  %s1099_s15 = smov %s976_s16 }
 0x10c   : > { %p12_p5 = scmp.ge.s32.totalorder %s15_s17, 4   ;;  %s1100_s16 = smov %s1102_s3 }
 0x10e   :  { %14 = sbr.rel (!%p12_p5) target bundleno = 2 (0x2), region = 77 }

// kernel: gcn_new_forward.5
= control target key start
LH: loop header
LB: loop body
LE: loop exit
PB: predicated region body
PF: predicated region fallthrough
CT: control target
= control target key end

     0   :  { %s995_s14 = smov 0   ;;  %s997_s15 = smov 0   ;;  %s1137_s0 = inlined_call_operand.vmem [shape: bf16[256,256], index: 0, kind: input, shape index: {}]   ;;  %s1138_s1 = inlined_call_operand.vmem [shape: bf16[256,128], index: 1, kind: input, shape index: {}]   ;;  %s1139_s2 = inlined_call_operand.<no memory space> [shape: f32[1], index: 2, kind: input, shape index: {}]   ;;  %s1140_s3 = inlined_call_operand.vmem [shape: f32[256,128], index: 3, kind: output, shape index: {}]  }
   0x1   :  { %8 = sst [smem:[#allocation3]] %s1139_s2  ;;  %s999_s16 = smov 0  }
   0x2 LB: > { %s26_s2 = sadd.s32 1, %s966_s15  ;;  %p763_p0 = scmp.ge.s32.totalorder %s970_s16, 1  ;;  %s970_s16 = sphi %s999_s16, %s14_s16   ;;  %s966_s15 = sphi %s997_s15, %s1142_s15   ;;  %s962_s14 = sphi %s995_s14, %s1141_s14  }
   0x3   : > { %p28_p1 = scmp.ge.s32.totalorder %s26_s2, 2  ;;  %p159_p2 = scmp.lt.s32.totalorder %s970_s16, 3 }
   0x5   : > { %s1144_s2 = smov (%p28_p1, %s26_s2), 0  ;;  %p160_p3 = pnand %p763_p0, %p159_p2 }
   0x6   : > { %v908_v0 = vld [vmem:[%s1138_s1 + $0x40] sm:$0xff] (!%p160_p3)   ;;  %s764_s19 = sshll.u32 (!%p160_p3), %s962_s14, 4  ;;  %v910_v2 = vld [vmem:[%s1138_s1 + $0x48] sm:$0xff] (!%p160_p3)   ;;  %v912_v4 = vld [vmem:[%s1138_s1 + $0x50] sm:$0xff] (!%p160_p3)   ;;  %s604_s30 = sld [smem:[#allocation3]] (!%p160_p3) }
   0x7   : > { %163 = sbr.rel (%p160_p3) target bundleno = 285 (0x11d), region = 32  ;;  %v909_v1 = vld [vmem:[%s1138_s1] sm:$0xff] (!%p160_p3)   ;;  %804 = vmatprep.subr.bf16.mxu0 (!%p160_p3), %v908_v0  ;;  %868 = vmatprep.subr.bf16.mxu1 (!%p160_p3), %v908_v0  ;;  %v911_v3 = vld [vmem:[%s1138_s1 + $0x8] sm:$0xff] (!%p160_p3)   ;;  %p190_p4 = scmp.lt.s32.totalorder (!%p160_p3), %s764_s19, 31  ;;  %v913_v5 = vld [vmem:[%s1138_s1 + $0x10] sm:$0xff] (!%p160_p3)  }
   0x8   : > { %805 = vmatpush3.bf16.msra.mxu0 (!%p160_p3), %v909_v1  ;;  %876 = vmatpush3.bf16.msra.mxu1 (!%p160_p3), %v909_v1  ;;  %v914_v6 = vld [vmem:[%s1138_s1 + $0x58] sm:$0xff] (!%p160_p3)   ;;  %v916_v8 = vld [vmem:[%s1138_s1 + $0x60] sm:$0xff] (!%p160_p3)   ;;  %v918_v10 = vld [vmem:[%s1138_s1 + $0x68] sm:$0xff] (!%p160_p3)  }
   0x9   : > { %806 = vmatprep.subr.bf16.mxu0 (!%p160_p3), %v910_v2  ;;  %869 = vmatprep.subr.bf16.mxu1 (!%p160_p3), %v910_v2  ;;  %v915_v7 = vld [vmem:[%s1138_s1 + $0x18] sm:$0xff] (!%p160_p3)   ;;  %v917_v9 = vld [vmem:[%s1138_s1 + $0x20] sm:$0xff] (!%p160_p3)   ;;  %v919_v13 = vld [vmem:[%s1138_s1 + $0x28] sm:$0xff] (!%p160_p3)  }
   0xa   : > { %v920_v14 = vld [vmem:[%s1138_s1 + $0x70] sm:$0xff] (!%p160_p3)   ;;  %v922_v16 = vld [vmem:[%s1138_s1 + $0x78] sm:$0xff] (!%p160_p3)  }
   0xb   : > { %v921_v15 = vld [vmem:[%s1138_s1 + $0x30] sm:$0xff] (!%p160_p3)   ;;  %v923_v17 = vld [vmem:[%s1138_s1 + $0x38] sm:$0xff] (!%p160_p3)  }
   0xc   : > { %807 = vmatpush3.bf16.msra.mxu0 (!%p160_p3), %v911_v3  ;;  %877 = vmatpush3.bf16.msra.mxu1 (!%p160_p3), %v911_v3  ;;  %v1087_v35 = vstv (!%p160_p3), %s604_s30 }
   0xd   : > { %808 = vmatprep.subr.bf16.mxu0 (!%p160_p3), %v912_v4  ;;  %870 = vmatprep.subr.bf16.mxu1 (!%p160_p3), %v912_v4 }
   0xe   : > { %s1146_s19 = smov (!%p190_p4, %s764_s19), 31 }
   0xf   : > { %s803_s7 = sshll.u32 %s1146_s19, 3 }
  0x10   : > { %809 = vmatpush3.bf16.msra.mxu0 %v913_v5  ;;  %878 = vmatpush3.bf16.msra.mxu1 %v913_v5  ;;  %s1048_s12 = scalar_lea.vmem %s1137_s0, %s803_s7  ;;  %s1094_s6 = scalar_lea.vmem %s1140_s3, %s803_s7 }
  0x11   : > { %810 = vmatprep.subr.bf16.mxu0 %v914_v6  ;;  %871 = vmatprep.subr.bf16.mxu1 %v914_v6  ;;  %v926_v11 = vld [vmem:[%s1048_s12 + $0x4] ss:$8 sps:$4 sm:$0xff]   ;;  %v924_v18 = vld [vmem:[%s1048_s12] ss:$8 sps:$4 sm:$0xff]   ;;  %v930_v20 = vld [vmem:[%s1048_s12 + $0x14] ss:$8 sps:$4 sm:$0xff]  }
  0x12   : > { %v929_v12 = vld [vmem:[%s1048_s12 + $0x44] ss:$8 sps:$4 sm:$0xff]   ;;  %504 = vmatprep.mubr.bf16.mxu0 %v926_v11  ;;  %v927_v19 = vld [vmem:[%s1048_s12 + $0x40] ss:$8 sps:$4 sm:$0xff]   ;;  %v932_v21 = vld [vmem:[%s1048_s12 + $0x54] ss:$8 sps:$4 sm:$0xff]  }
  0x13   : > { %536 = vmatprep.mubr.bf16.mxu1 %v929_v12  ;;  %v934_v22 = vld [vmem:[%s1048_s12 + $0x10] ss:$8 sps:$4 sm:$0xff]   ;;  %v936_v24 = vld [vmem:[%s1048_s12 + $0x24] ss:$8 sps:$4 sm:$0xff]   ;;  %v940_v26 = vld [vmem:[%s1048_s12 + $0x20] ss:$8 sps:$4 sm:$0xff]  }
  0x14   : > { %811 = vmatpush3.bf16.msra.mxu0 %v915_v7  ;;  %879 = vmatpush3.bf16.msra.mxu1 %v915_v7  ;;  %v935_v23 = vld [vmem:[%s1048_s12 + $0x50] ss:$8 sps:$4 sm:$0xff]   ;;  %v938_v25 = vld [vmem:[%s1048_s12 + $0x64] ss:$8 sps:$4 sm:$0xff]   ;;  %v941_v27 = vld [vmem:[%s1048_s12 + $0x60] ss:$8 sps:$4 sm:$0xff]  }
  0x15   : > { %812 = vmatprep.subr.bf16.mxu0 %v916_v8  ;;  %872 = vmatprep.subr.bf16.mxu1 %v916_v8  ;;  %v942_v28 = vld [vmem:[%s1048_s12 + $0x34] ss:$8 sps:$4 sm:$0xff]   ;;  %v946_v30 = vld [vmem:[%s1048_s12 + $0x30] ss:$8 sps:$4 sm:$0xff]  }
  0x16   : > { %v944_v29 = vld [vmem:[%s1048_s12 + $0x74] ss:$8 sps:$4 sm:$0xff]   ;;  %v947_v31 = vld [vmem:[%s1048_s12 + $0x70] ss:$8 sps:$4 sm:$0xff]  }
  0x18   : > { %813 = vmatpush3.bf16.msra.mxu0 %v917_v9  ;;  %880 = vmatpush3.bf16.msra.mxu1 %v917_v9 }
  0x19   : > { %814 = vmatprep.subr.bf16.mxu0 %v918_v10  ;;  %873 = vmatprep.subr.bf16.mxu1 %v918_v10 }
  0x1c   : > { %815 = vmatpush3.bf16.msra.mxu0 %v919_v13  ;;  %881 = vmatpush3.bf16.msra.mxu1 %v919_v13 }
  0x1d   : > { %816 = vmatprep.subr.bf16.mxu0 %v920_v14  ;;  %874 = vmatprep.subr.bf16.mxu1 %v920_v14 }
  0x20   : > { %817 = vmatpush3.bf16.msra.mxu0 %v921_v15  ;;  %882 = vmatpush3.bf16.msra.mxu1 %v921_v15 }
  0x21   : > { %818 = vmatprep.subr.bf16.mxu0 %v922_v16  ;;  %875 = vmatprep.subr.bf16.mxu1 %v922_v16 }
  0x24   : > { %819 = vmatpush3.bf16.msra.mxu0 %v923_v17  ;;  %883 = vmatpush3.bf16.msra.mxu1 %v923_v17 }
  0x27   : > { %505 = vmatmul.mubr.bf16.vlgmr.msra.gmra.mrb[0].mxu0 %v924_v18  ;;  %537 = vmatmul.mubr.bf16.vlgmr.msra.gmra.mrb[0].mxu1 %v927_v19 }
  0x28   : > { %512 = vmatprep.mubr.bf16.mxu0 %v930_v20  ;;  %544 = vmatprep.mubr.bf16.mxu1 %v932_v21 }
  0x2f   : > { %513 = vmatmul.mubr.bf16.gmra.mrb[4].mxu0 %v934_v22  ;;  %545 = vmatmul.mubr.bf16.gmra.mrb[4].mxu1 %v935_v23 }
  0x30   : > { %520 = vmatprep.mubr.bf16.mxu0 %v936_v24  ;;  %552 = vmatprep.mubr.bf16.mxu1 %v938_v25 }
  0x37   : > { %521 = vmatmul.mubr.bf16.gmra.mrb[8].mxu0 %v940_v26  ;;  %553 = vmatmul.mubr.bf16.gmra.mrb[8].mxu1 %v941_v27 }
  0x38   : > { %528 = vmatprep.mubr.bf16.mxu0 %v942_v28  ;;  %560 = vmatprep.mubr.bf16.mxu1 %v944_v29 }
  0x3f   : > { %529 = vmatmul.mubr.bf16.gmra.mrb[12].mxu0 %v946_v30  ;;  %561 = vmatmul.mubr.bf16.gmra.mrb[12].mxu1 %v947_v31 }
  0xfa   : > { %v820_v32 = vpop.f32.mrb[0].mxu0  ;;  %v844_v33 = vpop.f32.mrb[0].mxu1 }
  0xfb   : > { %v821_v34 = vpop.f32.mrb[1].mxu0  ;;  %v845_v36 = vpop.f32.mrb[1].mxu1 }
  0xfc   : > { %v822_v37 = vadd.f32 %v821_v34, %v820_v32  ;;  %v846_v38 = vadd.f32 %v845_v36, %v844_v33  ;;  %v823_v39 = vpop.f32.mrb[2].mxu0  ;;  %v847_v40 = vpop.f32.mrb[2].mxu1 }
  0xfd   : > { %v824_v41 = vpop.f32.mrb[3].mxu0  ;;  %v848_v42 = vpop.f32.mrb[3].mxu1 }
  0xfe   : > { %vm621_vm0 = vcmp.ge.f32.partialorder %v822_v37, 0.0  ;;  %v638_v43 = vmul.f32 %v822_v37, %v1087_v35  ;;  %vm629_vm1 = vcmp.ge.f32.partialorder %v846_v38, 0.0  ;;  %v646_v44 = vmul.f32 %v846_v38, %v1087_v35 }
  0xff   : > { %v825_v45 = vadd.f32 %v824_v41, %v823_v39  ;;  %v849_v46 = vadd.f32 %v848_v42, %v847_v40 }
 0x100   : > { %v654_v47 = vsel %vm621_vm0, %v822_v37, %v638_v43  ;;  %v662_v48 = vsel %vm629_vm1, %v846_v38, %v646_v44 }
 0x101   : > { %670 = vst [vmem:[%s1094_s6] sm:$0xff] %v654_v47  ;;  %678 = vst [vmem:[%s1094_s6 + $0x40] sm:$0xff] %v662_v48  ;;  %vm622_vm2 = vcmp.ge.f32.partialorder %v825_v45, 0.0  ;;  %v639_v49 = vmul.f32 %v825_v45, %v1087_v35  ;;  %vm630_vm3 = vcmp.ge.f32.partialorder %v849_v46, 0.0  ;;  %v647_v50 = vmul.f32 %v849_v46, %v1087_v35 }
 0x102   : > { %v826_v51 = vpop.f32.mrb[4].mxu0  ;;  %v850_v52 = vpop.f32.mrb[4].mxu1 }
 0x103   : > { %v655_v53 = vsel %vm622_vm2, %v825_v45, %v639_v49  ;;  %v663_v54 = vsel %vm630_vm3, %v849_v46, %v647_v50  ;;  %v827_v55 = vpop.f32.mrb[5].mxu0  ;;  %v851_v56 = vpop.f32.mrb[5].mxu1 }
 0x104   : > { %671 = vst [vmem:[%s1094_s6 + $0x8] sm:$0xff] %v655_v53  ;;  %679 = vst [vmem:[%s1094_s6 + $0x48] sm:$0xff] %v663_v54  ;;  %v828_v57 = vadd.f32 %v827_v55, %v826_v51  ;;  %v852_v58 = vadd.f32 %v851_v56, %v850_v52  ;;  %v829_v59 = vpop.f32.mrb[6].mxu0  ;;  %v853_v60 = vpop.f32.mrb[6].mxu1 }
 0x105   : > { %v830_v61 = vpop.f32.mrb[7].mxu0  ;;  %v854_v62 = vpop.f32.mrb[7].mxu1 }
 0x106   : > { %vm623_vm4 = vcmp.ge.f32.partialorder %v828_v57, 0.0  ;;  %v640_v63 = vmul.f32 %v828_v57, %v1087_v35  ;;  %vm631_vm5 = vcmp.ge.f32.partialorder %v852_v58, 0.0  ;;  %v648_v0 = vmul.f32 %v852_v58, %v1087_v35 }
 0x107   : > { %v831_v1 = vadd.f32 %v830_v61, %v829_v59  ;;  %v855_v2 = vadd.f32 %v854_v62, %v853_v60 }
 0x108   : > { %v656_v3 = vsel %vm623_vm4, %v828_v57, %v640_v63  ;;  %v664_v4 = vsel %vm631_vm5, %v852_v58, %v648_v0 }
 0x109   : > { %672 = vst [vmem:[%s1094_s6 + $0x10] sm:$0xff] %v656_v3  ;;  %680 = vst [vmem:[%s1094_s6 + $0x50] sm:$0xff] %v664_v4  ;;  %vm624_vm6 = vcmp.ge.f32.partialorder %v831_v1, 0.0  ;;  %v641_v5 = vmul.f32 %v831_v1, %v1087_v35  ;;  %vm632_vm7 = vcmp.ge.f32.partialorder %v855_v2, 0.0  ;;  %v649_v6 = vmul.f32 %v855_v2, %v1087_v35 }
 0x10a   : > { %v832_v7 = vpop.f32.mrb[8].mxu0  ;;  %v856_v8 = vpop.f32.mrb[8].mxu1 }
 0x10b   : > { %v657_v9 = vsel %vm624_vm6, %v831_v1, %v641_v5  ;;  %v665_v10 = vsel %vm632_vm7, %v855_v2, %v649_v6  ;;  %v833_v11 = vpop.f32.mrb[9].mxu0  ;;  %v857_v12 = vpop.f32.mrb[9].mxu1 }
 0x10c   : > { %673 = vst [vmem:[%s1094_s6 + $0x18] sm:$0xff] %v657_v9  ;;  %681 = vst [vmem:[%s1094_s6 + $0x58] sm:$0xff] %v665_v10  ;;  %v834_v13 = vadd.f32 %v833_v11, %v832_v7  ;;  %v858_v14 = vadd.f32 %v857_v12, %v856_v8  ;;  %v835_v15 = vpop.f32.mrb[10].mxu0  ;;  %v859_v16 = vpop.f32.mrb[10].mxu1 }
 0x10d   : > { %v836_v17 = vpop.f32.mrb[11].mxu0  ;;  %v860_v18 = vpop.f32.mrb[11].mxu1 }
 0x10e   : > { %vm625_vm8 = vcmp.ge.f32.partialorder %v834_v13, 0.0  ;;  %v642_v19 = vmul.f32 %v834_v13, %v1087_v35  ;;  %vm633_vm9 = vcmp.ge.f32.partialorder %v858_v14, 0.0  ;;  %v650_v20 = vmul.f32 %v858_v14, %v1087_v35 }
 0x10f   : > { %v837_v21 = vadd.f32 %v836_v17, %v835_v15  ;;  %v861_v22 = vadd.f32 %v860_v18, %v859_v16 }
 0x110   : > { %v658_v23 = vsel %vm625_vm8, %v834_v13, %v642_v19  ;;  %v666_v24 = vsel %vm633_vm9, %v858_v14, %v650_v20 }
 0x111   : > { %674 = vst [vmem:[%s1094_s6 + $0x20] sm:$0xff] %v658_v23  ;;  %682 = vst [vmem:[%s1094_s6 + $0x60] sm:$0xff] %v666_v24  ;;  %vm626_vm10 = vcmp.ge.f32.partialorder %v837_v21, 0.0  ;;  %v643_v25 = vmul.f32 %v837_v21, %v1087_v35  ;;  %vm634_vm11 = vcmp.ge.f32.partialorder %v861_v22, 0.0  ;;  %v651_v26 = vmul.f32 %v861_v22, %v1087_v35 }
 0x112   : > { %v838_v27 = vpop.f32.mrb[12].mxu0  ;;  %v862_v28 = vpop.f32.mrb[12].mxu1 }
 0x113   : > { %v659_v29 = vsel %vm626_vm10, %v837_v21, %v643_v25  ;;  %v667_v30 = vsel %vm634_vm11, %v861_v22, %v651_v26  ;;  %v839_v31 = vpop.f32.mrb[13].mxu0  ;;  %v863_v32 = vpop.f32.mrb[13].mxu1 }
 0x114   : > { %675 = vst [vmem:[%s1094_s6 + $0x28] sm:$0xff] %v659_v29  ;;  %683 = vst [vmem:[%s1094_s6 + $0x68] sm:$0xff] %v667_v30  ;;  %v840_v33 = vadd.f32 %v839_v31, %v838_v27  ;;  %v864_v34 = vadd.f32 %v863_v32, %v862_v28  ;;  %v841_v36 = vpop.f32.mrb[14].mxu0  ;;  %v865_v37 = vpop.f32.mrb[14].mxu1 }
 0x115   : > { %v842_v38 = vpop.f32.mrb[15].mxu0  ;;  %v866_v39 = vpop.f32.mrb[15].mxu1 }
 0x116   : > { %vm627_vm12 = vcmp.ge.f32.partialorder %v840_v33, 0.0  ;;  %v644_v40 = vmul.f32 %v840_v33, %v1087_v35  ;;  %vm635_vm13 = vcmp.ge.f32.partialorder %v864_v34, 0.0  ;;  %v652_v41 = vmul.f32 %v864_v34, %v1087_v35 }
 0x117   : > { %v843_v42 = vadd.f32 %v842_v38, %v841_v36  ;;  %v867_v43 = vadd.f32 %v866_v39, %v865_v37 }
 0x118   : > { %v660_v44 = vsel %vm627_vm12, %v840_v33, %v644_v40  ;;  %v668_v45 = vsel %vm635_vm13, %v864_v34, %v652_v41 }
 0x119   : > { %676 = vst [vmem:[%s1094_s6 + $0x30] sm:$0xff] %v660_v44  ;;  %684 = vst [vmem:[%s1094_s6 + $0x70] sm:$0xff] %v668_v45  ;;  %vm628_vm14 = vcmp.ge.f32.partialorder %v843_v42, 0.0  ;;  %v645_v46 = vmul.f32 %v843_v42, %v1087_v35  ;;  %vm636_vm15 = vcmp.ge.f32.partialorder %v867_v43, 0.0  ;;  %v653_v47 = vmul.f32 %v867_v43, %v1087_v35 }
 0x11b   : > { %v661_v48 = vsel %vm628_vm14, %v843_v42, %v645_v46  ;;  %v669_v49 = vsel %vm636_vm15, %v867_v43, %v653_v47 }
 0x11c   : > { %677 = vst [vmem:[%s1094_s6 + $0x38] sm:$0xff] %v661_v48  ;;  %685 = vst [vmem:[%s1094_s6 + $0x78] sm:$0xff] %v669_v49 }
 0x11d PF: > { %s14_s16 = sadd.s32 1, %s970_s16   ;;  %s1141_s14 = smov %s966_s15 }
 0x11e   : > { %p11_p5 = scmp.ge.s32.totalorder %s14_s16, 4   ;;  %s1142_s15 = smov %s1144_s2 }
 0x120   :  { %13 = sbr.rel (!%p11_p5) target bundleno = 2 (0x2), region = 71 }

// kernel: gcn_new_forward.3
= control target key start
LH: loop header
LB: loop body
LE: loop exit
PB: predicated region body
PF: predicated region fallthrough
CT: control target
= control target key end

     0   :  { %s1447_s0 = inlined_call_operand.hbm [shape: bf16[256,128], index: 0, kind: input, shape index: {}]   ;;  %s1448_s1 = inlined_call_operand.hbm [shape: bf16[128,128], index: 1, kind: input, shape index: {}]   ;;  %s1449_s2 = inlined_call_operand.vmem [shape: f32[1,128], index: 2, kind: input, shape index: {}]   ;;  %s1450_s3 = inlined_call_operand.<no memory space> [shape: f32[1], index: 3, kind: input, shape index: {}]   ;;  %s1451_s4 = inlined_call_operand.vmem [shape: bf16[256,128], index: 4, kind: output, shape index: {}]  }
   0x1   :  { %9 = sst [smem:[#allocation3]] %s1450_s3 }
   0x2   :  { %10 = vsyncpa [#allocation5], 0 }
   0x3   :  { %12 = vsyncpa [#allocation5 + $0x1], 0 }
   0x4   :  { %13 = vsyncpa [#allocation7], 0  ;;  %s1222_s17 = smov 0   ;;  %s1224_s18 = smov 0  }
   0x5   :  { %s1226_s19 = smov 0   ;;  %s1228_s20 = smov 0  }
   0x6   :  { %s1230_s21 = smov 0   ;;  %s1232_s22 = smov 0  }
   0x7 LB: > { %s816_s3 = sadd.s32 4294967295, %s1188_s22   ;;  %p53_p0 = scmp.ne.s32.totalorder %s1172_s18, %s1168_s17  ;;  %s1188_s22 = sphi %s1232_s22, %s19_s22   ;;  %s1184_s21 = sphi %s1230_s21, %s1468_s21   ;;  %s1180_s20 = sphi %s1228_s20, %s1467_s20   ;;  %s1176_s19 = sphi %s1226_s19, %s1466_s19   ;;  %s1172_s18 = sphi %s1224_s18, %s1465_s18   ;;  %s1168_s17 = sphi %s1222_s17, %s1464_s17  }
   0x8   : > { %p1252_p1 = scmp.eq.s32.totalorder %s816_s3, 0  ;;  %p818_p2 = scmp.ge.s32.totalorder %s1188_s22, 1 }
   0x9   : > { %p158_p3 = scmp.lt.s32.totalorder %s1188_s22, 3  ;;  %s1190_s26 = smov [#allocation6]  }
   0xa   : > { %s1456_s23 = scalar_select %p1252_p1, 1, 0 }
   0xb   : > { %p1260_p4 = por %p1252_p1, %p53_p0  ;;  %p1264_p5 = pnand %p818_p2, %p158_p3 }
   0xc   : > { %s173_s27 = sshll.u32 %s1190_s26, 4  ;;  %s31_s29 = sadd.s32 1, %s1184_s21  ;;  %s174_s27 = int_to_ptr.vmem [resolvable:$true] %s173_s27 }
   0xd   : > { %s1457_s24 = scalar_select %p1260_p4, 1, 0 }
   0xe   : > { %s1458_s25 = scalar_select %p1264_p5, 1, 0 }
   0xf   : > { %p998_p6 = pneg %p1264_p5  ;;  %s1076_s6 = scalar_lea.hbm %s1448_s1, 1024 }
  0x10   : > { %p1077_p8 = scmp.ne.s32.totalorder %s1448_s1, %s1076_s6  ;;  %p1083_p12 = scmp.lt.u32.totalorder %s1076_s6, %s1448_s1 }
  0x11   : > { %p1272_p7 = pnand %p998_p6, %p1252_p1 }
  0x13   : > { %p1078_p9 = pneg %p1272_p7 }
  0x15   : > { %p1079_p10 = pnand %p1078_p9, %p1077_p8 }
  0x17   : > { %p1080_p11 = pneg %p1079_p10 }
  0x19   : > { %p1085_p13 = pnand %p1083_p12, %p1080_p11 }
  0x1b   : > { %1088 = shalt.err (!%p1085_p13)
}
  0x1c   : > { %s1089_s11 = scalar_lea.vmem %s174_s27, 1024  ;;  %p1097_p6 = scmp.lt.s32.totalorder %s174_s27, %s174_s27 }
  0x1d   : > { %p1090_p0 = scmp.ne.s32.totalorder %s174_s27, %s1089_s11  ;;  %p1098_p1 = scmp.lt.s32.totalorder %s1089_s11, %s1089_s11 }
  0x1f   : > { %p1092_p2 = pnand %p1090_p0, %p1078_p9  ;;  %p1099_p4 = por %p1098_p1, %p1097_p6 }
  0x21   : > { %p1093_p3 = pneg %p1092_p2 }
  0x23   : > { %p1100_p5 = pnand %p1099_p4, %p1093_p3 }
  0x25   : > { %1103 = shalt.err (!%p1100_p5)
}
  0x26   : > { %s1191_s12 = smov 64   ;;  %s1192_s13 = smov 4  }
  0x27   : > { %1001 = dma.hbm_to_vmem [thread:$0]  (!%p1272_p7), %s1448_s1, 1024, %s174_s27, [#allocation7], %s1191_s12, %s1191_s12, %s1192_s13  }
  0x28   : > { %p33_p1 = scmp.ge.s32.totalorder %s31_s29, 2  ;;  %s40_s16 = sadd.s32 1, %s1176_s19 }
  0x29   : > { %p47_p4 = scmp.ne.s32.totalorder %s1176_s19, %s1172_s18  ;;  %p48_p5 = scmp.eq.s32.totalorder %s1188_s22, 0 }
  0x2a   : > { %s1470_s29 = smov (%p33_p1, %s31_s29), 0  ;;  %p1007_p9 = scmp.lt.s32.totalorder %s1188_s22, 2 }
  0x2b   : > { %p49_p8 = por %p48_p5, %p47_p4  ;;  %s35_s17 = ssub.s32 %s1184_s21, %s1470_s29 }
  0x2c   : > { %s193_s3 = sand.u32 1, %s1176_s19   ;;  %p38_p10 = scmp.eq.s32.totalorder %s35_s17, 0 }
  0x2d   : > { %s821_s26 = sshll.u32 %s193_s3, 6  ;;  %s864_s28 = sshll.u32 %s1184_s21, 10 }
  0x2e   : > { %s1308_s30 = scalar_select %p38_p10, %s1176_s19, %s40_s16  }
  0x2f   : > { %s1313_s27 = scalar_lea.hbm %s1447_s0, %s864_s28  ;;  %s197_s7 = scalar_lea.vmem [#allocation4], %s821_s26 }
  0x30   : > { %s205_s8 = sshll.u32 %s197_s7, 4  ;;  %p1315_p7 = pnand %p1007_p9, %p49_p8  ;;  %s1319_s8 = int_to_ptr.vmem [resolvable:$true] %s205_s8 }
  0x31   : > { %s1321_s10 = scalar_lea.sflag [#allocation5], %s193_s3  ;;  %s1104_s11 = scalar_lea.hbm %s1313_s27, 1024 }
  0x32   : > { %p1105_p11 = scmp.ne.s32.totalorder %s1313_s27, %s1104_s11  ;;  %p1106_p12 = pneg %p1315_p7 }
  0x33   : > { %s1109_s16 = scalar_lea.hbm %s1447_s0, 2048  ;;  %p1110_p2 = scmp.lt.u32.totalorder %s1313_s27, %s1447_s0 }
  0x34   : > { %p1107_p13 = pnand %p1106_p12, %p1105_p11  ;;  %p1111_p3 = scmp.lt.u32.totalorder %s1109_s16, %s1104_s11 }
  0x35   : > { %p1113_p1 = scmp.lt.u32.totalorder %s1104_s11, %s1313_s27 }
  0x36   : > { %p1108_p0 = pneg %p1107_p13  ;;  %p1112_p6 = por %p1111_p3, %p1110_p2 }
  0x38   : > { %p1114_p4 = por %p1113_p1, %p1112_p6 }
  0x3a   : > { %p1115_p5 = pnand %p1114_p4, %p1108_p0 }
  0x3c   : > { %1118 = shalt.err (!%p1115_p5)
}
  0x3d   : > { %s1119_s3 = scalar_lea.vmem %s1319_s8, 1024  ;;  %s1193_s28 = smov [#allocation4]  }
  0x3e   : > { %p1120_p8 = scmp.ne.s32.totalorder %s1319_s8, %s1119_s3  ;;  %s1124_s5 = sshll.u32 %s1193_s28, 4  ;;  %s1125_s5 = int_to_ptr.vmem [resolvable:$false] %s1124_s5 }
  0x3f   : > { %s1126_s6 = scalar_lea.vmem %s1125_s5, 2048  ;;  %p1127_p11 = scmp.lt.s32.totalorder %s1319_s8, %s1125_s5 }
  0x40   : > { %p1122_p9 = pnand %p1120_p8, %p1106_p12  ;;  %p1128_p13 = scmp.lt.s32.totalorder %s1126_s6, %s1119_s3 }
  0x42   : > { %p1123_p10 = pneg %p1122_p9  ;;  %p1129_p2 = por %p1128_p13, %p1127_p11 }
  0x44   : > { %p1130_p3 = pnand %p1129_p2, %p1123_p10 }
  0x46   : > { %1133 = shalt.err (!%p1130_p3)
}
  0x47   : > { %1005 = dma.hbm_to_vmem [thread:$0]  (!%p1315_p7), %s1313_s27, 1024, %s1319_s8, %s1321_s10, %s1191_s12, %s1191_s12, %s1192_s13  }
  0x48   : > { %p1461_p12 = scmp.ne.s32.totalorder %s1458_s25, 0 }
  0x49   : > { %s219_s7 = sand.u32 (!%p1461_p12), 1, %s1172_s18   ;;  %p1462_p0 = scmp.ne.s32.totalorder (!%p1461_p12), %s1457_s24, 0 }
  0x4a   : > { %217 = sbr.rel (%p1461_p12) target bundleno = 354 (0x162), region = 36  ;;  %s825_s11 = sshll.u32 (!%p1461_p12), %s219_s7, 6 }
  0x4b   : > { %s220_s14 = scalar_lea.sflag (!%p1461_p12), [#allocation5], %s219_s7  ;;  %s1355_s15 = scalar_lea.vmem (!%p1461_p12), [#allocation4], %s825_s11 }
  0x51   : > { %1159 = dma.done.wait (%p1462_p0), %s220_s14, 1024  }
  0x52   : > { %1161 = vsyncadd (%p1462_p0), %s220_s14, 4294966272  ;;  %p1463_p6 = scmp.ne.s32.totalorder %s1456_s23, 0 }
  0x54   : > { %1163 = dma.done.wait (%p1463_p6), [#allocation7], 1024  }
  0x55   : > { %1165 = vsyncadd (%p1463_p6), [#allocation7], 4294966272  ;;  %v1060_v0 = vld [vmem:[#allocation6] sm:$0xff]   ;;  %v1061_v1 = vld [vmem:[#allocation6 + $0x8] sm:$0xff]   ;;  %s596_s23 = sld [smem:[#allocation3]]  ;;  %s827_s24 = sshll.u32 %s1180_s20, 4 }
  0x56   : > { %944 = vmatprep.subr.bf16.mxu0 %v1060_v0  ;;  %976 = vmatprep.subr.bf16.mxu1 %v1060_v0  ;;  %v1062_v2 = vld [vmem:[#allocation6 + $0x10] sm:$0xff]   ;;  %v1063_v3 = vld [vmem:[#allocation6 + $0x18] sm:$0xff]   ;;  %v1068_v4 = vld [vmem:[%s1355_s15] sm:$0xff]   ;;  %p255_p7 = scmp.lt.s32.totalorder %s827_s24, 31 }
  0x57   : > { %945 = vmatpush3.bf16.msra.mxu0 %v1060_v0  ;;  %984 = vmatpush3.bf16.msra.mxu1 %v1060_v0  ;;  %v1069_v5 = vld [vmem:[%s1355_s15 + $0x20] sm:$0xff]   ;;  %v1065_v7 = vld [vmem:[#allocation6 + $0x28] sm:$0xff]   ;;  %v1066_v8 = vld [vmem:[#allocation6 + $0x30] sm:$0xff]  }
  0x58   : > { %946 = vmatprep.subr.bf16.mxu0 %v1061_v1  ;;  %977 = vmatprep.subr.bf16.mxu1 %v1061_v1  ;;  %v1064_v6 = vld [vmem:[#allocation6 + $0x20] sm:$0xff]   ;;  %v1067_v9 = vld [vmem:[#allocation6 + $0x38] sm:$0xff]   ;;  %v1070_v10 = vld [vmem:[%s1355_s15 + $0x8] sm:$0xff]   ;;  %s1472_s24 = smov (!%p255_p7, %s827_s24), 31 }
  0x59   : > { %960 = vmatprep.mubr.bf16.mxu0 %v1068_v4  ;;  %968 = vmatprep.mubr.bf16.mxu1 %v1069_v5  ;;  %v1071_v11 = vld [vmem:[%s1355_s15 + $0x28] sm:$0xff]   ;;  %v1072_v12 = vld [vmem:[%s1355_s15 + $0x10] sm:$0xff]   ;;  %v1074_v14 = vld [vmem:[%s1355_s15 + $0x18] sm:$0xff]   ;;  %s828_s20 = sshll.u32 %s1472_s24, 2 }
  0x5a   : > { %v1073_v13 = vld [vmem:[%s1355_s15 + $0x30] sm:$0xff]   ;;  %v1075_v15 = vld [vmem:[%s1355_s15 + $0x38] sm:$0xff]   ;;  %v1377_v16 = vld [vmem:[%s1449_s2] ss:$0 sm:$0xff]  ;;  %s1403_s8 = scalar_lea.vmem %s1451_s4, %s828_s20 }
  0x5b   : > { %947 = vmatpush3.bf16.msra.mxu0 %v1061_v1  ;;  %985 = vmatpush3.bf16.msra.mxu1 %v1061_v1  ;;  %v1379_v18 = vstv %s596_s23 }
  0x5c   : > { %948 = vmatprep.subr.bf16.mxu0 %v1062_v2  ;;  %978 = vmatprep.subr.bf16.mxu1 %v1062_v2 }
  0x5f   : > { %949 = vmatpush3.bf16.msra.mxu0 %v1062_v2  ;;  %986 = vmatpush3.bf16.msra.mxu1 %v1062_v2 }
  0x60   : > { %950 = vmatprep.subr.bf16.mxu0 %v1063_v3  ;;  %979 = vmatprep.subr.bf16.mxu1 %v1063_v3 }
  0x63   : > { %951 = vmatpush3.bf16.msra.mxu0 %v1063_v3  ;;  %987 = vmatpush3.bf16.msra.mxu1 %v1063_v3 }
  0x64   : > { %952 = vmatprep.subr.bf16.mxu0 %v1064_v6  ;;  %980 = vmatprep.subr.bf16.mxu1 %v1064_v6 }
  0x67   : > { %953 = vmatpush3.bf16.msra.mxu0 %v1064_v6  ;;  %988 = vmatpush3.bf16.msra.mxu1 %v1064_v6 }
  0x68   : > { %954 = vmatprep.subr.bf16.mxu0 %v1065_v7  ;;  %981 = vmatprep.subr.bf16.mxu1 %v1065_v7 }
  0x6b   : > { %955 = vmatpush3.bf16.msra.mxu0 %v1065_v7  ;;  %989 = vmatpush3.bf16.msra.mxu1 %v1065_v7 }
  0x6c   : > { %956 = vmatprep.subr.bf16.mxu0 %v1066_v8  ;;  %982 = vmatprep.subr.bf16.mxu1 %v1066_v8 }
  0x6f   : > { %957 = vmatpush3.bf16.msra.mxu0 %v1066_v8  ;;  %990 = vmatpush3.bf16.msra.mxu1 %v1066_v8 }
  0x70   : > { %958 = vmatprep.subr.bf16.mxu0 %v1067_v9  ;;  %983 = vmatprep.subr.bf16.mxu1 %v1067_v9 }
  0x73   : > { %959 = vmatpush3.bf16.msra.mxu0 %v1067_v9  ;;  %991 = vmatpush3.bf16.msra.mxu1 %v1067_v9 }
  0x76   : > { %961 = vmatmul.mubr.bf16.vlgmr.msra.gmra.mrb[0].mxu0 %v1070_v10  ;;  %969 = vmatmul.mubr.bf16.vlgmr.msra.gmra.mrb[0].mxu1 %v1071_v11 }
  0x77   : > { %964 = vmatprep.mubr.bf16.mxu0 %v1072_v12  ;;  %972 = vmatprep.mubr.bf16.mxu1 %v1073_v13 }
  0x7e   : > { %965 = vmatmul.mubr.bf16.gmra.mrb[4].mxu0 %v1074_v14  ;;  %973 = vmatmul.mubr.bf16.gmra.mrb[4].mxu1 %v1075_v15 }
 0x149   : > { %v962_v17 = vpop.f32.mrb[0].mxu0  ;;  %v970_v19 = vpop.f32.mrb[0].mxu1 }
 0x14a   : > { %v582_v20 = vadd.f32 %v962_v17, %v1377_v16  ;;  %v590_v21 = vadd.f32 %v970_v19, %v1377_v16  ;;  %v459_v22 = vpop.f32.mrb[1].mxu0  ;;  %v491_v23 = vpop.f32.mrb[1].mxu1 }
 0x14b   : > { %v580_v24 = vadd.f32 %v1377_v16, %v459_v22  ;;  %v588_v25 = vadd.f32 %v1377_v16, %v491_v23  ;;  %v963_v26 = vpop.f32.mrb[2].mxu0  ;;  %v971_v27 = vpop.f32.mrb[2].mxu1 }
 0x14c   : > { %vm599_vm0 = vcmp.ge.f32.partialorder %v582_v20, 0.0  ;;  %v616_v28 = vmul.f32 %v1379_v18, %v582_v20  ;;  %vm607_vm1 = vcmp.ge.f32.partialorder %v590_v21, 0.0  ;;  %v624_v29 = vmul.f32 %v1379_v18, %v590_v21  ;;  %v462_v30 = vpop.f32.mrb[3].mxu0  ;;  %v494_v31 = vpop.f32.mrb[3].mxu1 }
 0x14d   : > { %vm597_vm2 = vcmp.ge.f32.partialorder %v580_v24, 0.0  ;;  %v614_v32 = vmul.f32 %v1379_v18, %v580_v24  ;;  %vm605_vm3 = vcmp.ge.f32.partialorder %v588_v25, 0.0  ;;  %v622_v33 = vmul.f32 %v1379_v18, %v588_v25 }
 0x14e   : > { %v632_v34 = vsel %vm599_vm0, %v582_v20, %v616_v28  ;;  %v640_v35 = vsel %vm607_vm1, %v590_v21, %v624_v29  ;;  %v583_v36 = vadd.f32 %v963_v26, %v1377_v16  ;;  %v591_v37 = vadd.f32 %v971_v27, %v1377_v16 }
 0x14f   : > { %v630_v38 = vsel %vm597_vm2, %v580_v24, %v614_v32  ;;  %v638_v39 = vsel %vm605_vm3, %v588_v25, %v622_v33  ;;  %v581_v40 = vadd.f32 %v1377_v16, %v462_v30  ;;  %v589_v41 = vadd.f32 %v1377_v16, %v494_v31 }
 0x150   : > { %vm600_vm4 = vcmp.ge.f32.partialorder %v583_v36, 0.0  ;;  %v617_v42 = vmul.f32 %v1379_v18, %v583_v36  ;;  %vm608_vm5 = vcmp.ge.f32.partialorder %v591_v37, 0.0  ;;  %v625_v43 = vmul.f32 %v1379_v18, %v591_v37 }
 0x151   : > { %vm598_vm6 = vcmp.ge.f32.partialorder %v581_v40, 0.0  ;;  %v615_v44 = vmul.f32 %v1379_v18, %v581_v40  ;;  %vm606_vm7 = vcmp.ge.f32.partialorder %v589_v41, 0.0  ;;  %v623_v45 = vmul.f32 %v1379_v18, %v589_v41  ;;  %v966_v46 = vpop.f32.mrb[4].mxu0  ;;  %v974_v47 = vpop.f32.mrb[4].mxu1 }
 0x152   : > { %v633_v48 = vsel %vm600_vm4, %v583_v36, %v617_v42  ;;  %v641_v49 = vsel %vm608_vm5, %v591_v37, %v625_v43  ;;  %v586_v50 = vadd.f32 %v966_v46, %v1377_v16  ;;  %v594_v51 = vadd.f32 %v974_v47, %v1377_v16  ;;  %v475_v52 = vpop.f32.mrb[5].mxu0  ;;  %v507_v53 = vpop.f32.mrb[5].mxu1 }
 0x153   : > { %v889_v54 = vpack.c.bf16 %v633_v48, %v632_v34  ;;  %v909_v55 = vpack.c.bf16 %v641_v49, %v640_v35  ;;  %v631_v56 = vsel %vm598_vm6, %v581_v40, %v615_v44  ;;  %v639_v57 = vsel %vm606_vm7, %v589_v41, %v623_v45  ;;  %v967_v58 = vpop.f32.mrb[6].mxu0  ;;  %v975_v59 = vpop.f32.mrb[6].mxu1 }
 0x154   : > { %v884_v60 = vpack.c.bf16 %v631_v56, %v630_v38  ;;  %v904_v61 = vpack.c.bf16 %v639_v57, %v638_v39  ;;  %vm603_vm8 = vcmp.ge.f32.partialorder %v586_v50, 0.0  ;;  %v620_v62 = vmul.f32 %v1379_v18, %v586_v50  ;;  %v478_v63 = vpop.f32.mrb[7].mxu0  ;;  %v510_v0 = vpop.f32.mrb[7].mxu1 }
 0x155   : > { %921 = vst [vmem:[%s1403_s8 + $0x8] sm:$0xff] %v889_v54   ;;  %925 = vst [vmem:[%s1403_s8 + $0x28] sm:$0xff] %v909_v55   ;;  %vm611_vm9 = vcmp.ge.f32.partialorder %v594_v51, 0.0  ;;  %v628_v1 = vmul.f32 %v1379_v18, %v594_v51  ;;  %v584_v2 = vadd.f32 %v1377_v16, %v475_v52  ;;  %v592_v3 = vadd.f32 %v1377_v16, %v507_v53 }
 0x156   : > { %885 = vst [vmem:[%s1403_s8] sm:$0xff] %v884_v60   ;;  %924 = vst [vmem:[%s1403_s8 + $0x20] sm:$0xff] %v904_v61   ;;  %v587_v4 = vadd.f32 %v967_v58, %v1377_v16  ;;  %v595_v5 = vadd.f32 %v975_v59, %v1377_v16  ;;  %v585_v6 = vadd.f32 %v1377_v16, %v478_v63 }
 0x157   : > { %v636_v7 = vsel %vm603_vm8, %v586_v50, %v620_v62  ;;  %v618_v8 = vmul.f32 %v1379_v18, %v584_v2  ;;  %vm601_vm10 = vcmp.ge.f32.partialorder %v584_v2, 0.0  ;;  %v644_v10 = vsel %vm611_vm9, %v594_v51, %v628_v1 }
 0x158   : > { %vm604_vm11 = vcmp.ge.f32.partialorder %v587_v4, 0.0  ;;  %v621_v9 = vmul.f32 %v1379_v18, %v587_v4  ;;  %vm612_vm12 = vcmp.ge.f32.partialorder %v595_v5, 0.0  ;;  %v629_v11 = vmul.f32 %v1379_v18, %v595_v5 }
 0x159   : > { %vm602_vm13 = vcmp.ge.f32.partialorder %v585_v6, 0.0  ;;  %v619_v12 = vmul.f32 %v1379_v18, %v585_v6  ;;  %vm609_vm14 = vcmp.ge.f32.partialorder %v592_v3, 0.0  ;;  %v626_v13 = vmul.f32 %v1379_v18, %v592_v3 }
 0x15a   : > { %v637_v14 = vsel %vm604_vm11, %v587_v4, %v621_v9  ;;  %v593_v15 = vadd.f32 %v1377_v16, %v510_v0  ;;  %v634_v17 = vsel %vm601_vm10, %v584_v2, %v618_v8  ;;  %v645_v20 = vsel %vm612_vm12, %v595_v5, %v629_v11 }
 0x15b   : > { %v899_v19 = vpack.c.bf16 %v637_v14, %v636_v7  ;;  %v635_v21 = vsel %vm602_vm13, %v585_v6, %v619_v12  ;;  %v919_v22 = vpack.c.bf16 %v645_v20, %v644_v10  ;;  %v642_v25 = vsel %vm609_vm14, %v592_v3, %v626_v13 }
 0x15c   : > { %v894_v23 = vpack.c.bf16 %v635_v21, %v634_v17  ;;  %vm610_vm15 = vcmp.ge.f32.partialorder %v593_v15, 0.0  ;;  %v627_v24 = vmul.f32 %v1379_v18, %v593_v15 }
 0x15d   : > { %923 = vst [vmem:[%s1403_s8 + $0x18] sm:$0xff] %v899_v19   ;;  %927 = vst [vmem:[%s1403_s8 + $0x38] sm:$0xff] %v919_v22  }
 0x15e   : > { %922 = vst [vmem:[%s1403_s8 + $0x10] sm:$0xff] %v894_v23   ;;  %v643_v26 = vsel %vm610_vm15, %v593_v15, %v627_v24 }
 0x15f   : > { %v914_v27 = vpack.c.bf16 %v643_v26, %v642_v25 }
 0x161   : > { %926 = vst [vmem:[%s1403_s8 + $0x30] sm:$0xff] %v914_v27  }
 0x162 PF: > { %s19_s22 = sadd.s32 1, %s1188_s22   ;;  %s1464_s17 = smov %s1172_s18 }
 0x163   : > { %p16_p1 = scmp.ge.s32.totalorder %s19_s22, 4   ;;  %s1465_s18 = smov %s1176_s19 }
 0x164   : > { %s1466_s19 = smov %s1308_s30  ;;  %s1467_s20 = smov %s1184_s21 }
 0x165   : > { %s1468_s21 = smov %s1470_s29  ;;  %18 = sbr.rel (!%p16_p1) target bundleno = 7 (0x7), region = 89 }
 0x16c   :  { %748 = vsyncpa [#allocation5], 1 }
 0x16d   :  { %750 = vsyncpa [#allocation5 + $0x1], 1 }
 0x16e   :  { %751 = vsyncpa [#allocation7], 1 }

</bundles_post_ra>
